<compile_context>
chip_gen: v7x
topology: tpu7x:2x2x1
jax: 0.10.0
libtpu: 0.0.40
codegen_flags: <defaults>
</compile_context>

<pallas_src>
import math

import jax
import jax.numpy as jnp
from jax.experimental import pallas as pl
from jax.experimental.pallas import tpu as pltpu


def _round_up(x, m):
    return ((x + m - 1) // m) * m


def critic_kernel(obs_ref, act_ref, w1_ref, b1_ref, w2_ref, b2_ref,
                  w3_ref, b3_ref, o_ref):
    # ---- Layer 1: fused concat in VMEM (f32) -> single K=32 bf16 matmul.
    x = jnp.concatenate([obs_ref[...], act_ref[...]], axis=-1)
    h1 = jnp.dot(x.astype(jnp.bfloat16), w1_ref[...],
                 preferred_element_type=jnp.float32)
    h1 = jnp.maximum(h1 + b1_ref[...], 0.0)          # bias + ReLU in f32 (VPU)

    # ---- Layer 2 (MXU, f32 accumulate).
    h2 = jnp.dot(h1.astype(jnp.bfloat16), w2_ref[...],
                 preferred_element_type=jnp.float32)
    h2 = jnp.maximum(h2 + b2_ref[...], 0.0)

    # ---- Layer 3: output width 1 -> VPU multiply + lane reduction (XLU is
    # idle here), relaid out lane-major so the store is one dense (1,TM) row.
    q = jnp.sum(h2 * w3_ref[...], axis=-1) + b3_ref[0]      # (TM,) f32
    o_ref[...] = q.reshape(o_ref.shape)


def critic_forward(obs, act, params):
    """Equivalent of Critic.forward: cat -> Linear/ReLU/Linear/ReLU/Linear -> squeeze(-1)."""
    w1, b1, w2, b2, w3, b3 = params
    B, obs_dim = obs.shape
    act_dim = act.shape[1]
    in_dim, H1 = w1.shape
    H2 = w2.shape[1]

    # Batch tiling: >=2 grid steps whenever possible (v7x megacore), tiles up
    # to 512 rows to amortize per-step overhead; weights stay VMEM-resident.
    if B <= 8:
        TM = B
    else:
        TM = min(512, max(8, _round_up(pl.cdiv(B, 2), 8)))
    grid_n = pl.cdiv(B, TM)

    resident = lambda shape: pl.BlockSpec(shape, lambda i: (0,) * len(shape))

    flops = 2 * B * (in_dim * H1 + H1 * H2 + H2)
    bytes_accessed = (obs.size * obs.dtype.itemsize
                      + act.size * act.dtype.itemsize
                      + w1.size * w1.dtype.itemsize
                      + w2.size * w2.dtype.itemsize
                      + (b1.size + b2.size + w3.size + b3.size) * 4
                      + B * 4)

    out = pl.pallas_call(
        critic_kernel,
        out_shape=jax.ShapeDtypeStruct((grid_n, 1, TM), jnp.float32),
        grid=(grid_n,),
        in_specs=[
            pl.BlockSpec((TM, obs_dim), lambda i: (i, 0)),      # obs tile
            pl.BlockSpec((TM, act_dim), lambda i: (i, 0)),      # act tile
            resident((in_dim, H1)),                             # w1 (bf16)
            resident((1, H1)),                                  # b1 (f32)
            resident((H1, H2)),                                 # w2 (bf16)
            resident((1, H2)),                                  # b2 (f32)
            resident((1, H2)),                                  # w3 row (f32)
            pl.BlockSpec(memory_space=pltpu.MemorySpace.SMEM),  # b3 scalar
        ],
        out_specs=pl.BlockSpec((1, 1, TM), lambda i: (i, 0, 0)),
        compiler_params=pltpu.CompilerParams(
            dimension_semantics=("parallel",)),
        cost_estimate=pl.CostEstimate(
            flops=flops, transcendentals=0, bytes_accessed=bytes_accessed),
    )(obs, act, w1, b1, w2, b2, w3, b3)

    # Partial last tile rows are padded/garbage -> slice them off.
    return out.reshape(-1)[:B]          # == .squeeze(-1) in the PyTorch module


def init_critic_params(key, obs_dim, act_dim, hidden=(128, 128)):
    """Deterministic init matching nn.Linear's U(-1/sqrt(fan_in), 1/sqrt(fan_in))."""
    in_dim = obs_dim + act_dim
    h1, h2 = hidden
    k1, k2, k3 = jax.random.split(key, 3)

    def linear(k, fan_in, fan_out):
        kw, kb = jax.random.split(k)
        bound = 1.0 / math.sqrt(fan_in)
        w = jax.random.uniform(kw, (fan_in, fan_out), jnp.float32, -bound, bound)
        b = jax.random.uniform(kb, (fan_out,), jnp.float32, -bound, bound)
        return w, b

    w1, b1 = linear(k1, in_dim, h1)
    w2, b2 = linear(k2, h1, h2)
    w3, b3 = linear(k3, h2, 1)

    # Weights in bf16 (halved DMA bytes), biases f32, w3 kept f32 (only 512 B)
    # and stored as a (1, h2) row for the in-kernel VPU multiply + reduce.
    return (w1.astype(jnp.bfloat16),        # (in_dim, h1)
            b1.reshape(1, h1),              # (1, h1) f32
            w2.astype(jnp.bfloat16),        # (h1, h2)
            b2.reshape(1, h2),              # (1, h2) f32
            w3.T,                           # (1, h2) f32
            b3)                             # (1,)   f32 -> SMEM


if __name__ == "__main__":
    key = jax.random.PRNGKey(0)
    k_obs, k_act, k_params = jax.random.split(key, 3)

    # Small shapes consistent with Critic(obs_dim, act_dim); hidden = (128, 128).
    batch, obs_dim, act_dim = 8, 24, 8

    obs = jax.random.normal(k_obs, (batch, obs_dim), jnp.float32)
    act = jax.random.normal(k_act, (batch, act_dim), jnp.float32)
    params = init_critic_params(k_params, obs_dim, act_dim)

    q = critic_forward(obs, act, params)
    jax.block_until_ready(q)
    assert q.shape == (batch,), q.shape

    # Pure-JAX reference with the same (bf16 weights, f32 accumulate) precision.
    w1, b1, w2, b2, w3, b3 = params
    x = jnp.concatenate([obs, act], axis=-1).astype(jnp.bfloat16)
    h1 = jnp.maximum(
        jnp.dot(x, w1, preferred_element_type=jnp.float32) + b1, 0.0)
    h2 = jnp.maximum(
        jnp.dot(h1.astype(jnp.bfloat16), w2,
                preferred_element_type=jnp.float32) + b2, 0.0)
    ref = jnp.sum(h2 * w3, axis=-1) + b3[0]

    assert jnp.allclose(q, ref, atol=2e-3, rtol=2e-3), (q, ref)
    print("KERNEL_OK")
</pallas_src>

<mosaic_0001>
module attributes {stable_mosaic.version = 11 : i64} {
  func.func @critic_kernel(%arg0: i32, %arg1: memref<8x24xf32, #tpu.memory_space<vmem>>, %arg2: memref<8x8xf32, #tpu.memory_space<vmem>>, %arg3: memref<32x128xbf16, #tpu.memory_space<vmem>>, %arg4: memref<1x128xf32, #tpu.memory_space<vmem>>, %arg5: memref<128x128xbf16, #tpu.memory_space<vmem>>, %arg6: memref<1x128xf32, #tpu.memory_space<vmem>>, %arg7: memref<1x128xf32, #tpu.memory_space<vmem>>, %arg8: memref<1xf32, #tpu.memory_space<smem>>, %arg9: memref<1x1x8xf32, #tpu.memory_space<vmem>>) attributes {dimension_semantics = [#tpu.dimension_semantics<parallel>], iteration_bounds = array<i64: 1>, scalar_prefetch = 0 : i64, scratch_operands = 0 : i64, tpu.core_type = #tpu.core_type<tc>, window_params = [{transform_indices = @transform_0, window_bounds = array<i64: 8, 24>}, {transform_indices = @transform_1, window_bounds = array<i64: 8, 8>}, {pipeline_mode = #tpu.pipeline_mode<synchronous>, transform_indices = @transform_2, window_bounds = array<i64: 32, 128>}, {pipeline_mode = #tpu.pipeline_mode<synchronous>, transform_indices = @transform_3, window_bounds = array<i64: 1, 128>}, {pipeline_mode = #tpu.pipeline_mode<synchronous>, transform_indices = @transform_4, window_bounds = array<i64: 128, 128>}, {pipeline_mode = #tpu.pipeline_mode<synchronous>, transform_indices = @transform_5, window_bounds = array<i64: 1, 128>}, {pipeline_mode = #tpu.pipeline_mode<synchronous>, transform_indices = @transform_6, window_bounds = array<i64: 1, 128>}, {transform_indices = @transform_7, window_bounds = array<i64: 1>}, {transform_indices = @transform_8, window_bounds = array<i64: 1, 1, 8>}]} {
    %c0 = arith.constant 0 : index
    %c0_0 = arith.constant 0 : index
    %0 = vector.load %arg1[%c0, %c0_0] : memref<8x24xf32, #tpu.memory_space<vmem>>, vector<8x24xf32>
    %c0_1 = arith.constant 0 : index
    %c0_2 = arith.constant 0 : index
    %1 = vector.load %arg2[%c0_1, %c0_2] : memref<8x8xf32, #tpu.memory_space<vmem>>, vector<8x8xf32>
    %2 = tpu.concatenate %0, %1 in 1 : vector<8x24xf32>, vector<8x8xf32> -> vector<8x32xf32>
    %3 = arith.truncf %2 : vector<8x32xf32> to vector<8x32xbf16>
    %c0_3 = arith.constant 0 : index
    %c0_4 = arith.constant 0 : index
    %4 = vector.load %arg3[%c0_3, %c0_4] : memref<32x128xbf16, #tpu.memory_space<vmem>>, vector<32x128xbf16>
    %cst = arith.constant dense<0.000000e+00> : vector<8x128xf32>
    %5 = tpu.matmul %3, %4, %cst {dimension_numbers = #tpu.dot_dimension_numbers<[1], [0], [0], [1], [0, 0, 1, 1], [], []>} : vector<8x32xbf16>, vector<32x128xbf16>, vector<8x128xf32> -> vector<8x128xf32>
    %c0_5 = arith.constant 0 : index
    %c0_6 = arith.constant 0 : index
    %6 = vector.load %arg4[%c0_5, %c0_6] : memref<1x128xf32, #tpu.memory_space<vmem>>, vector<1x128xf32>
    %7 = vector.broadcast %6 : vector<1x128xf32> to vector<8x128xf32>
    %8 = arith.addf %5, %7 : vector<8x128xf32>
    %cst_7 = arith.constant 0.000000e+00 : f32
    %9 = vector.broadcast %cst_7 : f32 to vector<8x128xf32>
    %10 = arith.maximumf %8, %9 : vector<8x128xf32>
    %11 = arith.truncf %10 : vector<8x128xf32> to vector<8x128xbf16>
    %c0_8 = arith.constant 0 : index
    %c0_9 = arith.constant 0 : index
    %12 = vector.load %arg5[%c0_8, %c0_9] : memref<128x128xbf16, #tpu.memory_space<vmem>>, vector<128x128xbf16>
    %cst_10 = arith.constant dense<0.000000e+00> : vector<8x128xf32>
    %13 = tpu.matmul %11, %12, %cst_10 {dimension_numbers = #tpu.dot_dimension_numbers<[1], [0], [0], [1], [0, 0, 1, 1], [], []>} : vector<8x128xbf16>, vector<128x128xbf16>, vector<8x128xf32> -> vector<8x128xf32>
    %c0_11 = arith.constant 0 : index
    %c0_12 = arith.constant 0 : index
    %14 = vector.load %arg6[%c0_11, %c0_12] : memref<1x128xf32, #tpu.memory_space<vmem>>, vector<1x128xf32>
    %15 = vector.broadcast %14 : vector<1x128xf32> to vector<8x128xf32>
    %16 = arith.addf %13, %15 : vector<8x128xf32>
    %cst_13 = arith.constant 0.000000e+00 : f32
    %17 = vector.broadcast %cst_13 : f32 to vector<8x128xf32>
    %18 = arith.maximumf %16, %17 : vector<8x128xf32>
    %c0_14 = arith.constant 0 : index
    %c0_15 = arith.constant 0 : index
    %19 = vector.load %arg7[%c0_14, %c0_15] : memref<1x128xf32, #tpu.memory_space<vmem>>, vector<1x128xf32>
    %20 = vector.broadcast %19 : vector<1x128xf32> to vector<8x128xf32>
    %21 = arith.mulf %18, %20 : vector<8x128xf32>
    %cst_16 = arith.constant dense<0.000000e+00> : vector<8xf32>
    %22 = vector.multi_reduction <add>, %21, %cst_16 [1] : vector<8x128xf32> to vector<8xf32>
    %c0_17 = arith.constant 0 : index
    %23 = memref.load %arg8[%c0_17] : memref<1xf32, #tpu.memory_space<smem>>
    %24 = vector.broadcast %23 : f32 to vector<8xf32>
    %25 = arith.addf %22, %24 : vector<8xf32>
    %26 = vector.shape_cast %25 : vector<8xf32> to vector<1x1x8xf32>
    %c0_18 = arith.constant 0 : index
    %c0_19 = arith.constant 0 : index
    %c0_20 = arith.constant 0 : index
    %27 = vector.load %arg9[%c0_18, %c0_19, %c0_20] : memref<1x1x8xf32, #tpu.memory_space<vmem>>, vector<1x1x8xf32>
    tpu.vector_store %arg9[%c0_18, %c0_19, %c0_20], %26 {strides = array<i32>} : memref<1x1x8xf32, #tpu.memory_space<vmem>>, vector<1x1x8xf32>,
    return
  }
  func.func @transform_0(%arg0: i32) -> (i32, i32) {
    %c0_i32 = arith.constant 0 : i32
    %c0_i32_0 = arith.constant 0 : i32
    return %arg0, %c0_i32 : i32, i32
  }
  func.func @transform_1(%arg0: i32) -> (i32, i32) {
    %c0_i32 = arith.constant 0 : i32
    %c0_i32_0 = arith.constant 0 : i32
    return %arg0, %c0_i32 : i32, i32
  }
  func.func @transform_2(%arg0: i32) -> (i32, i32) {
    %c0_i32 = arith.constant 0 : i32
    %c0_i32_0 = arith.constant 0 : i32
    %c0_i32_1 = arith.constant 0 : i32
    return %c0_i32, %c0_i32_0 : i32, i32
  }
  func.func @transform_3(%arg0: i32) -> (i32, i32) {
    %c0_i32 = arith.constant 0 : i32
    %c0_i32_0 = arith.constant 0 : i32
    %c0_i32_1 = arith.constant 0 : i32
    return %c0_i32, %c0_i32_0 : i32, i32
  }
  func.func @transform_4(%arg0: i32) -> (i32, i32) {
    %c0_i32 = arith.constant 0 : i32
    %c0_i32_0 = arith.constant 0 : i32
    %c0_i32_1 = arith.constant 0 : i32
    return %c0_i32, %c0_i32_0 : i32, i32
  }
  func.func @transform_5(%arg0: i32) -> (i32, i32) {
    %c0_i32 = arith.constant 0 : i32
    %c0_i32_0 = arith.constant 0 : i32
    %c0_i32_1 = arith.constant 0 : i32
    return %c0_i32, %c0_i32_0 : i32, i32
  }
  func.func @transform_6(%arg0: i32) -> (i32, i32) {
    %c0_i32 = arith.constant 0 : i32
    %c0_i32_0 = arith.constant 0 : i32
    %c0_i32_1 = arith.constant 0 : i32
    return %c0_i32, %c0_i32_0 : i32, i32
  }
  func.func @transform_7(%arg0: i32) -> i32 {
    %c0_i32 = arith.constant 0 : i32
    %c0_i32_0 = arith.constant 0 : i32
    return %c0_i32 : i32
  }
  func.func @transform_8(%arg0: i32) -> (i32, i32, i32) {
    %c0_i32 = arith.constant 0 : i32
    %c0_i32_0 = arith.constant 0 : i32
    %c0_i32_1 = arith.constant 0 : i32
    return %arg0, %c0_i32, %c0_i32_0 : i32, i32, i32
  }
}

</mosaic_0001>

<bundles_post_ra>
// kernel: tpu_custom_call.1
= control target key start
LH: loop header
LB: loop body
LE: loop exit
PB: predicated region body
PF: predicated region fallthrough
CT: control target
= control target key end

     0   :  { %14 = vsyncpa [#allocation4], 0  ;;  %s632_s0 = inlined_call_operand.hbm [shape: f32[8,24], index: 0, kind: input, shape index: {}]   ;;  %s633_s1 = inlined_call_operand.hbm [shape: f32[8,8], index: 1, kind: input, shape index: {}]   ;;  %s634_s2 = inlined_call_operand.hbm [shape: bf16[32,128], index: 2, kind: input, shape index: {}]   ;;  %s635_s3 = inlined_call_operand.vmem [shape: f32[1,128], index: 3, kind: input, shape index: {}]   ;;  %s636_s4 = inlined_call_operand.hbm [shape: bf16[128,128], index: 4, kind: input, shape index: {}]   ;;  %s637_s5 = inlined_call_operand.vmem [shape: f32[1,128], index: 5, kind: input, shape index: {}]   ;;  %s638_s6 = inlined_call_operand.vmem [shape: f32[1,128], index: 6, kind: input, shape index: {}]   ;;  %s639_s7 = inlined_call_operand.<no memory space> [shape: f32[1], index: 7, kind: input, shape index: {}]   ;;  %s640_s8 = inlined_call_operand.hbm [shape: f32[1,1,8], index: 8, kind: output, shape index: {}]  }
   0x1   :  { %15 = vsyncpa [#allocation7], 0 }
   0x2   :  { %16 = vsyncpa [#allocation10], 0 }
   0x3   :  { %17 = vsyncpa [#allocation5], 0  ;;  %s505_s27 = smov [#allocation6]   ;;  %s506_s29 = smov [#allocation3]  }
   0x4   :  { %s34_s28 = sshll.u32 %s505_s27, 4  ;;  %s24_s30 = sshll.u32 %s506_s29, 4  ;;  %s35_s28 = int_to_ptr.vmem [resolvable:$true] %s34_s28  ;;  %s25_s30 = int_to_ptr.vmem [resolvable:$true] %s24_s30 }
   0x5   :  { %s387_s11 = scalar_lea.hbm %s633_s1, 128 }
   0x6   :  { %p388_p0 = scmp.ne.s32.totalorder %s633_s1, %s387_s11  ;;  %p391_p1 = scmp.lt.u32.totalorder %s387_s11, %s633_s1 }
   0x8   :  { %p393_p2 = pnand %p391_p1, %p388_p0 }
   0xa   :  { %396 = shalt.err (!%p393_p2)
}
   0xb   :  { %s397_s16 = scalar_lea.vmem %s35_s28, 128  ;;  %p402_p4 = scmp.lt.s32.totalorder %s35_s28, %s35_s28 }
   0xc   :  { %p398_p3 = scmp.ne.s32.totalorder %s35_s28, %s397_s16  ;;  %p403_p5 = scmp.lt.s32.totalorder %s397_s16, %s397_s16 }
   0xe   :  { %p404_p6 = por %p403_p5, %p402_p4 }
  0x10   :  { %p405_p7 = pnand %p404_p6, %p398_p3 }
  0x12   :  { %408 = shalt.err (!%p405_p7)
}
  0x13   :  { %37 = dma.hbm_to_vmem [thread:$0]  %s633_s1, 128, %s35_s28, [#allocation7]  }
  0x14   :  { %s409_s21 = scalar_lea.hbm %s632_s0, 128 }
  0x15   :  { %p410_p8 = scmp.ne.s32.totalorder %s632_s0, %s409_s21  ;;  %p413_p9 = scmp.lt.u32.totalorder %s409_s21, %s632_s0 }
  0x17   :  { %p415_p10 = pnand %p413_p9, %p410_p8 }
  0x19   :  { %418 = shalt.err (!%p415_p10)
}
  0x1a   :  { %s419_s26 = scalar_lea.vmem %s25_s30, 128  ;;  %p424_p12 = scmp.lt.s32.totalorder %s25_s30, %s25_s30 }
  0x1b   :  { %p420_p11 = scmp.ne.s32.totalorder %s25_s30, %s419_s26  ;;  %p425_p13 = scmp.lt.s32.totalorder %s419_s26, %s419_s26 }
  0x1d   :  { %p426_p0 = por %p425_p13, %p424_p12 }
  0x1f   :  { %p427_p1 = pnand %p426_p0, %p420_p11 }
  0x21   :  { %430 = shalt.err (!%p427_p1)
}
  0x22   :  { %27 = dma.hbm_to_vmem [thread:$0]  %s632_s0, 128, %s25_s30, [#allocation4]  }
  0x23   :  { %s507_s28 = smov [#allocation8]   ;;  %s431_s11 = scalar_lea.hbm %s634_s2, 256 }
  0x24   :  { %s43_s29 = sshll.u32 %s507_s28, 4  ;;  %p432_p2 = scmp.ne.s32.totalorder %s634_s2, %s431_s11  ;;  %s44_s29 = int_to_ptr.vmem [resolvable:$true] %s43_s29 }
  0x25   :  { %p435_p3 = scmp.lt.u32.totalorder %s431_s11, %s634_s2 }
  0x27   :  { %p437_p4 = pnand %p435_p3, %p432_p2 }
  0x29   :  { %440 = shalt.err (!%p437_p4)
}
  0x2a   :  { %s441_s16 = scalar_lea.vmem %s44_s29, 256  ;;  %p446_p6 = scmp.lt.s32.totalorder %s44_s29, %s44_s29 }
  0x2b   :  { %p442_p5 = scmp.ne.s32.totalorder %s44_s29, %s441_s16  ;;  %p447_p7 = scmp.lt.s32.totalorder %s441_s16, %s441_s16 }
  0x2d   :  { %p448_p8 = por %p447_p7, %p446_p6 }
  0x2f   :  { %p449_p9 = pnand %p448_p8, %p442_p5 }
  0x31   :  { %452 = shalt.err (!%p449_p9)
}
  0x32   :  { %s508_s0 = smov 64   ;;  %s509_s30 = smov 4  }
  0x33   :  { %49 = dma.hbm_to_vmem [thread:$0]  %s634_s2, 256, %s44_s29, [#allocation7], %s508_s0, %s508_s0, %s509_s30  }
  0x34   :  { %s510_s19 = smov [#allocation9]   ;;  %s453_s23 = scalar_lea.hbm %s636_s4, 1024 }
  0x35   :  { %s57_s20 = sshll.u32 %s510_s19, 4  ;;  %p454_p10 = scmp.ne.s32.totalorder %s636_s4, %s453_s23  ;;  %s58_s20 = int_to_ptr.vmem [resolvable:$true] %s57_s20 }
  0x36   :  { %p457_p11 = scmp.lt.u32.totalorder %s453_s23, %s636_s4 }
  0x38   :  { %p459_p12 = pnand %p457_p11, %p454_p10 }
  0x3a   :  { %462 = shalt.err (!%p459_p12)
}
  0x3b   :  { %s463_s27 = scalar_lea.vmem %s58_s20, 1024  ;;  %p468_p0 = scmp.lt.s32.totalorder %s58_s20, %s58_s20 }
  0x3c   :  { %p464_p13 = scmp.ne.s32.totalorder %s58_s20, %s463_s27  ;;  %p469_p1 = scmp.lt.s32.totalorder %s463_s27, %s463_s27 }
  0x3e   :  { %p470_p2 = por %p469_p1, %p468_p0 }
  0x40   :  { %p471_p3 = pnand %p470_p2, %p464_p13 }
  0x42   :  { %474 = shalt.err (!%p471_p3)
}
  0x43   :  { %63 = dma.hbm_to_vmem [thread:$0]  %s636_s4, 1024, %s58_s20, [#allocation10], %s508_s0, %s508_s0, %s509_s30  }
  0x44   :  { %497 = dma.done.wait [#allocation4], 128  }
  0x45   :  { %498 = vsyncadd [#allocation4], 4294967168 }
  0x46   :  { %499 = dma.done.wait [#allocation7], 384  }
  0x47   :  { %500 = vsyncadd [#allocation7], 4294966912 }
  0x48   :  { %501 = dma.done.wait [#allocation10], 1024  }
  0x49   :  { %502 = vsyncadd [#allocation10], 4294966272  ;;  %v511_v0 = vmov 0.0   ;;  %vm512_vm0 = vmmov 0   ;;  %v84_v1 = vld [vmem:[#allocation6] sm:$0xff]  ;;  %s513_s29 = smov 24   ;;  %v287_v33 = vlaneseq  ;;  %v284_v36 = vstv %s639_s7 }
  0x4a   :  { %339 = vmatprep.subr.bf16.mxu0 %v511_v0  ;;  %343 = vmatprep.mubr.msk.bf16.mxu0 %vm512_vm0, %v511_v0  ;;  %v377_v2 = vld [vmem:[#allocation8] sm:$0xff]   ;;  %v378_v3 = vld [vmem:[#allocation8 + $0x8] sm:$0xff]   ;;  %v379_v4 = vld [vmem:[#allocation9] sm:$0xff]   ;;  %vm89_vm1 = vcmask 195584   ;;  %vm115_vm2 = vcmask 261120   ;;  %vm294_vm3 = vcmask 57344  }
  0x4b   :  { %347 = vmatprep.subr.bf16.mxu1 %v511_v0  ;;  %363 = vmatprep.mubr.msk.bf16.mxu1 %vm512_vm0, %v511_v0  ;;  %v380_v5 = vld [vmem:[#allocation9 + $0x8] sm:$0xff]   ;;  %v381_v6 = vld [vmem:[#allocation9 + $0x10] sm:$0xff]   ;;  %v382_v7 = vld [vmem:[#allocation9 + $0x18] sm:$0xff]   ;;  %v288_v34 = vand.u32 127, %v287_v33  ;;  %v290_v35 = vshrl.u32 %v287_v33, 7 }
  0x4c   :  { %86 = vrot.lane.b32.xlu0 %v84_v1, %s513_s29  ;;  %340 = vmatpush3.bf16.msra.mxu0 %v377_v2  ;;  %v383_v8 = vld [vmem:[#allocation9 + $0x20] sm:$0xff]   ;;  %v384_v9 = vld [vmem:[#allocation9 + $0x28] sm:$0xff]   ;;  %v385_v14 = vld [vmem:[#allocation9 + $0x30] sm:$0xff]  }
  0x4d   :  { %341 = vmatprep.subr.bf16.mxu0 %v511_v0  ;;  %348 = vmatpush3.bf16.msra.mxu1 %v379_v4  ;;  %v83_v10 = vld [vmem:[#allocation3] sm:$0xff]  ;;  %v386_v15 = vld [vmem:[#allocation9 + $0x38] sm:$0xff]   ;;  %v291_v37 = vsub.s32 %v288_v34, %v290_v35 }
  0x4e   :  { %349 = vmatprep.subr.bf16.mxu1 %v511_v0  ;;  %v313_v16 = vld [vmem:[%s635_s3] ss:$0 sm:$0xff] }
  0x4f   :  { %v317_v24 = vld [vmem:[%s637_s5] ss:$0 sm:$0xff]  ;;  %s514_s5 = smov [#allocation11]  }
  0x50   :  { %342 = vmatpush3.bf16.msra.mxu0 %v378_v3  ;;  %v326_v29 = vld [vmem:[%s638_s6] ss:$0 sm:$0xff]  ;;  %s302_s15 = sshll.u32 %s514_s5, 4  ;;  %s303_s15 = int_to_ptr.vmem [resolvable:$true] %s302_s15 }
  0x51   :  { %350 = vmatpush3.bf16.msra.mxu1 %v380_v5  ;;  %s475_s6 = scalar_lea.vmem %s303_s15, 16  ;;  %s479_s16 = scalar_lea.vmem %s303_s15, 32 }
  0x52   :  { %351 = vmatprep.subr.bf16.mxu1 %v511_v0  ;;  %p476_p4 = scmp.ne.s32.totalorder %s303_s15, %s475_s6  ;;  %p480_p5 = scmp.lt.s32.totalorder %s303_s15, %s303_s15 }
  0x53   :  { %p481_p6 = scmp.lt.s32.totalorder %s479_s16, %s475_s6 }
  0x55   :  { %352 = vmatpush3.bf16.msra.mxu1 %v381_v6  ;;  %p482_p7 = por %p481_p6, %p480_p5 }
  0x56   :  { %353 = vmatprep.subr.bf16.mxu1 %v511_v0 }
  0x57   :  { %p483_p8 = pnand %p482_p7, %p476_p4 }
  0x59   :  { %354 = vmatpush3.bf16.msra.mxu1 %v382_v7 }
  0x5a   :  { %355 = vmatprep.subr.bf16.mxu1 %v511_v0 }
  0x5d   :  { %356 = vmatpush3.bf16.msra.mxu1 %v383_v8 }
  0x5e   :  { %357 = vmatprep.subr.bf16.mxu1 %v511_v0 }
  0x61   :  { %358 = vmatpush3.bf16.msra.mxu1 %v384_v9 }
  0x62   :  { %359 = vmatprep.subr.bf16.mxu1 %v511_v0 }
  0x65   :  { %360 = vmatpush3.bf16.msra.mxu1 %v385_v14 }
  0x66   :  { %361 = vmatprep.subr.bf16.mxu1 %v511_v0 }
  0x69   :  { %362 = vmatpush3.bf16.msra.mxu1 %v386_v15 }
  0xbe   :  { %v87_v11 = vpop.permute.xlu0 %86 }
  0xbf   :  { %v90_v12 = vsel %vm89_vm1, %v83_v10, %v87_v11 }
  0xc0   :  { %v91_v13 = vpack.c.bf16 %v90_v12, %v90_v12 }
  0xc2   :  { %344 = vmatmul.mubr.msk.bf16.vlgmr.msra.gmra.mrb[0].mxu0 %vm115_vm2, %v91_v13 }
 0x195   :  { %v153_v17 = vpop.f32.mrb[0].mxu0 }
 0x196   :  { %v154_v18 = vadd.f32 %v313_v16, %v153_v17  ;;  %v345_v19 = vpop.f32.mrb[1].mxu0 }
 0x197   :  { %v156_v20 = vpop.f32.mrb[2].mxu0 }
 0x198   :  { %v159_v21 = vmax.f32 %v154_v18, 0.0  ;;  %v346_v22 = vpop.f32.mrb[3].mxu0 }
 0x19a   :  { %v160_v23 = vpack.c.bf16 %v159_v21, %v159_v21 }
 0x19c   :  { %364 = vmatmul.mubr.bf16.vlgmr.msra.gmra.mrb[0].mxu1 %v160_v23 }
 0x26f   :  { %v266_v25 = vpop.f32.mrb[0].mxu1 }
 0x270   :  { %v267_v26 = vadd.f32 %v317_v24, %v266_v25  ;;  %v365_v27 = vpop.f32.mrb[1].mxu1 }
 0x271   :  { %v269_v28 = vpop.f32.mrb[2].mxu1 }
 0x272   :  { %v272_v30 = vmax.f32 %v267_v26, 0.0  ;;  %v366_v31 = vpop.f32.mrb[3].mxu1 }
 0x274   :  { %v280_v32 = vmul.f32 %v326_v29, %v272_v30 }
 0x276   :  { %281 = vadd.xlane.f32.xlu0 %v280_v32 }
 0x303   :  { %v282_v38 = vpop.xlane.xlu0 %281 }
 0x304   :  { %v285_v39 = vadd.f32 %v284_v36, %v282_v38 }
 0x306   :  { %v292_v40 = vrot.slane %v285_v39, %v291_v37 }
 0x308   :  { %295 = vst.msk [vmem:[#allocation11] sm:$0x1] %vm294_vm3, %v292_v40 }
 0x309   :  { %486 = shalt.err (!%p483_p8)
}
 0x30a   :  { %s487_s7 = scalar_lea.hbm %s640_s8, 16 }
 0x30b   :  { %p488_p9 = scmp.ne.s32.totalorder %s640_s8, %s487_s7  ;;  %p491_p10 = scmp.lt.u32.totalorder %s487_s7, %s640_s8 }
 0x30d   :  { %p493_p11 = pnand %p491_p10, %p488_p9 }
 0x30f   :  { %496 = shalt.err (!%p493_p11)
}
 0x310   :  { %305 = dma.vmem_to_hbm [thread:$0]  %s303_s15, 16, %s640_s8, [#allocation5]  }
 0x311   :  { %503 = dma.done.wait [#allocation5], 16  }
 0x312   :  { %504 = vsyncadd [#allocation5], 4294967280 }
 0x313   :  { %309 = vsyncpa [#allocation4], 1 }
 0x314   :  { %310 = vsyncpa [#allocation7], 1 }
 0x315   :  { %311 = vsyncpa [#allocation10], 1 }
 0x316   :  { %312 = vsyncpa [#allocation5], 1 }

</bundles_post_ra>
